<compile_context>
chip_gen: v7x
topology: tpu7x:2x2x1
jax: 0.10.0
libtpu: 0.0.40
codegen_flags: <defaults>
</compile_context>

<pallas_src>
import jax
import jax.numpy as jnp
from jax.experimental import pallas as pl
from jax.experimental.pallas import tpu as pltpu


# ----------------------------------------------------------------------------- kernels

def _loss_body(ax, ay, gt_t, w=None):
    """ax, ay: (Na,1) f32; gt_t: (2,Nb) f32; w: optional (Na,1) f32 -> (1,1) loss."""
    bx = gt_t[0:1, :]                       # (1, Nb)   sublane slice (cheap)
    by = gt_t[1:2, :]                       # (1, Nb)

    dx = ax - bx                            # (Na, Nb)
    dy = ay - by                            # (Na, Nb)
    dis = dx * dx + dy * dy                 # pairwise squared distances (VPU)

    dismin_p2g = jnp.min(dis, axis=1, keepdims=True)   # (Na, 1)
    dismin_g2p = jnp.min(dis, axis=0, keepdims=True)   # (1, Nb)

    dp = dismin_p2g if w is None else dismin_p2g * w   # (Na, 1)

    loss = (jnp.mean(dp, axis=0, keepdims=True)
            + jnp.max(dp, axis=0, keepdims=True)
            + jnp.mean(dismin_g2p, axis=1, keepdims=True)
            + jnp.max(dismin_g2p, axis=1, keepdims=True))   # (1, 1)
    return loss * (1.0 / 200.0)


def _hausdorff_kernel(ax_ref, ay_ref, gt_t_ref, out_ref):
    out_ref[...] = _loss_body(ax_ref[...], ay_ref[...], gt_t_ref[...])


def _hausdorff_kernel_weighted(ax_ref, ay_ref, gt_t_ref, w_ref, out_ref):
    out_ref[...] = _loss_body(ax_ref[...], ay_ref[...], gt_t_ref[...], w_ref[...])


# ----------------------------------------------------------------------------- wrappers

def hausdorff_loss_batched(py_pred, py_gt, score=None):
    """Batched forward of HausdorffLoss.

    py_pred: (B, Na, 2) f32, py_gt: (B, Nb, 2) f32, score: optional (B, Na, 1) f32.
    Returns (B,) per-instance losses (each already divided by 200).
    """
    py_pred = py_pred.astype(jnp.float32)
    py_gt = py_gt.astype(jnp.float32)
    B, Na, _ = py_pred.shape
    _, Nb, _ = py_gt.shape

    # Layout prep in plain-JAX glue (fused by XLA around the custom call).
    ax = py_pred[:, :, 0:1]                 # (B, Na, 1)
    ay = py_pred[:, :, 1:2]                 # (B, Na, 1)
    gt_t = jnp.swapaxes(py_gt, 1, 2)        # (B, 2, Nb)

    in_specs = [
        pl.BlockSpec((None, Na, 1), lambda b: (b, 0, 0)),
        pl.BlockSpec((None, Na, 1), lambda b: (b, 0, 0)),
        pl.BlockSpec((None, 2, Nb), lambda b: (b, 0, 0)),
    ]
    inputs = [ax, ay, gt_t]
    kernel = _hausdorff_kernel
    bytes_accessed = 4 * B * (2 * Na + 2 * Nb + 1)

    if score is not None:
        s = jnp.clip(score.astype(jnp.float32)[:, :, 0], 0.1, 0.9)  # (B, Na)
        weight = ((1.0 - s) * 2.0)[:, :, None]                      # (B, Na, 1)
        in_specs.append(pl.BlockSpec((None, Na, 1), lambda b: (b, 0, 0)))
        inputs.append(weight)
        kernel = _hausdorff_kernel_weighted
        bytes_accessed += 4 * B * Na

    cost = pl.CostEstimate(
        flops=5 * B * Na * Nb + 4 * B * (Na + Nb),
        transcendentals=0,
        bytes_accessed=bytes_accessed,
    )

    out = pl.pallas_call(
        kernel,
        out_shape=jax.ShapeDtypeStruct((B, 1, 1), jnp.float32),
        grid=(B,),
        in_specs=in_specs,
        out_specs=pl.BlockSpec((None, 1, 1), lambda b: (b, 0, 0)),
        compiler_params=pltpu.CompilerParams(
            dimension_semantics=("parallel",)),
        cost_estimate=cost,
    )(*inputs)
    return out[:, 0, 0]                     # (B,)


def hausdorff_loss(py_pred, py_gt, score=None):
    """Single-instance API matching the PyTorch module: py_pred/py_gt (N,2), score (N,1)."""
    py_pred = py_pred[None]
    py_gt = py_gt[None]
    if score is not None:
        score = score[None]
    return hausdorff_loss_batched(py_pred, py_gt, score)[0]


# ----------------------------------------------------------------------------- reference

def _reference(py_pred, py_gt, score=None):
    # pure-JAX reference mirroring the PyTorch forward (single instance)
    dis = jnp.sum((py_pred[:, None, :] - py_gt[None, :, :]) ** 2, axis=-1)
    dismin_p2g = jnp.min(dis, axis=1)
    dismin_g2p = jnp.min(dis, axis=0)
    if score is not None:
        s = jnp.clip(jnp.squeeze(score, axis=1), 0.1, 0.9)
        w = (1.0 - s) * 2.0
        loss = jnp.mean(dismin_p2g * w) + jnp.max(dismin_p2g * w)
    else:
        loss = jnp.mean(dismin_p2g) + jnp.max(dismin_p2g)
    loss += jnp.mean(dismin_g2p) + jnp.max(dismin_g2p)
    return loss / 200.0


if __name__ == "__main__":
    key = jax.random.PRNGKey(0)
    k1, k2, k3 = jax.random.split(key, 3)
    B, pnum = 4, 128  # module's self.pnum = 128; small batch of polygon instances
    py_pred = jax.random.uniform(k1, (B, pnum, 2), dtype=jnp.float32) * 64.0
    py_gt = jax.random.uniform(k2, (B, pnum, 2), dtype=jnp.float32) * 64.0
    score = jax.random.uniform(k3, (B, pnum, 1), dtype=jnp.float32)

    # batched, score=None path (specialized kernel, no weight DMA)
    loss = jax.block_until_ready(hausdorff_loss_batched(py_pred, py_gt))
    ref = jax.vmap(lambda p, g: _reference(p, g))(py_pred, py_gt)
    assert jnp.allclose(loss, ref, rtol=1e-5, atol=1e-6), (loss, ref)

    # batched, scored path
    loss_s = jax.block_until_ready(hausdorff_loss_batched(py_pred, py_gt, score))
    ref_s = jax.vmap(_reference)(py_pred, py_gt, score)
    assert jnp.allclose(loss_s, ref_s, rtol=1e-5, atol=1e-6), (loss_s, ref_s)

    # single-instance API (matches the nn.Module signature)
    l0 = jax.block_until_ready(hausdorff_loss(py_pred[0], py_gt[0]))
    assert jnp.allclose(l0, ref[0], rtol=1e-5, atol=1e-6), (l0, ref[0])
    l0s = jax.block_until_ready(hausdorff_loss(py_pred[0], py_gt[0], score[0]))
    assert jnp.allclose(l0s, ref_s[0], rtol=1e-5, atol=1e-6), (l0s, ref_s[0])

    print("KERNEL_OK")
</pallas_src>

<mosaic_0001>
module attributes {stable_mosaic.version = 11 : i64} {
  func.func @_hausdorff_kernel(%arg0: i32, %arg1: memref<1x128x1xf32, #tpu.memory_space<vmem>>, %arg2: memref<1x128x1xf32, #tpu.memory_space<vmem>>, %arg3: memref<1x2x128xf32, #tpu.memory_space<vmem>>, %arg4: memref<1x1x1xf32, #tpu.memory_space<vmem>>) attributes {dimension_semantics = [#tpu.dimension_semantics<parallel>], iteration_bounds = array<i64: 4>, scalar_prefetch = 0 : i64, scratch_operands = 0 : i64, tpu.core_type = #tpu.core_type<tc>, window_params = [{transform_indices = @transform_0, window_bounds = array<i64: 1, 128, 1>}, {transform_indices = @transform_1, window_bounds = array<i64: 1, 128, 1>}, {transform_indices = @transform_2, window_bounds = array<i64: 1, 2, 128>}, {transform_indices = @transform_3, window_bounds = array<i64: 1, 1, 1>}]} {
    %c0 = arith.constant 0 : index
    %c0_0 = arith.constant 0 : index
    %c0_1 = arith.constant 0 : index
    %0 = vector.load %arg1[%c0, %c0_0, %c0_1] : memref<1x128x1xf32, #tpu.memory_space<vmem>>, vector<1x128x1xf32>
    %1 = vector.shape_cast %0 : vector<1x128x1xf32> to vector<128x1xf32>
    %c0_2 = arith.constant 0 : index
    %c0_3 = arith.constant 0 : index
    %c0_4 = arith.constant 0 : index
    %2 = vector.load %arg2[%c0_2, %c0_3, %c0_4] : memref<1x128x1xf32, #tpu.memory_space<vmem>>, vector<1x128x1xf32>
    %3 = vector.shape_cast %2 : vector<1x128x1xf32> to vector<128x1xf32>
    %c0_5 = arith.constant 0 : index
    %c0_6 = arith.constant 0 : index
    %c0_7 = arith.constant 0 : index
    %4 = vector.load %arg3[%c0_5, %c0_6, %c0_7] : memref<1x2x128xf32, #tpu.memory_space<vmem>>, vector<1x2x128xf32>
    %5 = vector.shape_cast %4 : vector<1x2x128xf32> to vector<2x128xf32>
    %6 = vector.extract_strided_slice %5 {offsets = [0, 0], sizes = [1, 128], strides = [1, 1]} : vector<2x128xf32> to vector<1x128xf32>
    %7 = vector.extract_strided_slice %5 {offsets = [1, 0], sizes = [1, 128], strides = [1, 1]} : vector<2x128xf32> to vector<1x128xf32>
    %8 = vector.broadcast %1 : vector<128x1xf32> to vector<128x128xf32>
    %9 = vector.broadcast %6 : vector<1x128xf32> to vector<128x128xf32>
    %10 = arith.subf %8, %9 : vector<128x128xf32>
    %11 = vector.broadcast %3 : vector<128x1xf32> to vector<128x128xf32>
    %12 = vector.broadcast %7 : vector<1x128xf32> to vector<128x128xf32>
    %13 = arith.subf %11, %12 : vector<128x128xf32>
    %14 = arith.mulf %10, %10 : vector<128x128xf32>
    %15 = arith.mulf %13, %13 : vector<128x128xf32>
    %16 = arith.addf %14, %15 : vector<128x128xf32>
    %cst = arith.constant dense<0x7F800000> : vector<128xf32>
    %17 = vector.multi_reduction <minimumf>, %16, %cst [1] : vector<128x128xf32> to vector<128xf32>
    %18 = vector.shape_cast %17 : vector<128xf32> to vector<128x1xf32>
    %cst_8 = arith.constant dense<0x7F800000> : vector<128xf32>
    %19 = vector.multi_reduction <minimumf>, %16, %cst_8 [0] : vector<128x128xf32> to vector<128xf32>
    %20 = vector.shape_cast %19 : vector<128xf32> to vector<1x128xf32>
    %cst_9 = arith.constant dense<0.000000e+00> : vector<1xf32>
    %21 = vector.multi_reduction <add>, %18, %cst_9 [0] : vector<128x1xf32> to vector<1xf32>
    %22 = vector.shape_cast %21 : vector<1xf32> to vector<1x1xf32>
    %cst_10 = arith.constant 1.280000e+02 : f32
    %23 = vector.broadcast %cst_10 : f32 to vector<1x1xf32>
    %24 = arith.divf %22, %23 : vector<1x1xf32>
    %cst_11 = arith.constant dense<0xFF800000> : vector<1xf32>
    %25 = vector.multi_reduction <maximumf>, %18, %cst_11 [0] : vector<128x1xf32> to vector<1xf32>
    %26 = vector.shape_cast %25 : vector<1xf32> to vector<1x1xf32>
    %27 = arith.addf %24, %26 : vector<1x1xf32>
    %cst_12 = arith.constant dense<0.000000e+00> : vector<1xf32>
    %28 = vector.multi_reduction <add>, %20, %cst_12 [1] : vector<1x128xf32> to vector<1xf32>
    %29 = vector.shape_cast %28 : vector<1xf32> to vector<1x1xf32>
    %cst_13 = arith.constant 1.280000e+02 : f32
    %30 = vector.broadcast %cst_13 : f32 to vector<1x1xf32>
    %31 = arith.divf %29, %30 : vector<1x1xf32>
    %32 = arith.addf %27, %31 : vector<1x1xf32>
    %cst_14 = arith.constant dense<0xFF800000> : vector<1xf32>
    %33 = vector.multi_reduction <maximumf>, %20, %cst_14 [1] : vector<1x128xf32> to vector<1xf32>
    %34 = vector.shape_cast %33 : vector<1xf32> to vector<1x1xf32>
    %35 = arith.addf %32, %34 : vector<1x1xf32>
    %cst_15 = arith.constant 5.000000e-03 : f32
    %36 = vector.broadcast %cst_15 : f32 to vector<1x1xf32>
    %37 = arith.mulf %35, %36 : vector<1x1xf32>
    %c0_16 = arith.constant 0 : index
    %c0_17 = arith.constant 0 : index
    %c0_18 = arith.constant 0 : index
    %38 = vector.load %arg4[%c0_16, %c0_17, %c0_18] : memref<1x1x1xf32, #tpu.memory_space<vmem>>, vector<1x1x1xf32>
    %39 = vector.shape_cast %38 : vector<1x1x1xf32> to vector<1x1xf32>
    %40 = vector.shape_cast %37 : vector<1x1xf32> to vector<1x1x1xf32>
    tpu.vector_store %arg4[%c0_16, %c0_17, %c0_18], %40 {strides = array<i32>} : memref<1x1x1xf32, #tpu.memory_space<vmem>>, vector<1x1x1xf32>,
    return
  }
  func.func @transform_0(%arg0: i32) -> (i32, i32, i32) {
    %c0_i32 = arith.constant 0 : i32
    %c0_i32_0 = arith.constant 0 : i32
    %c0_i32_1 = arith.constant 0 : i32
    return %arg0, %c0_i32, %c0_i32_0 : i32, i32, i32
  }
  func.func @transform_1(%arg0: i32) -> (i32, i32, i32) {
    %c0_i32 = arith.constant 0 : i32
    %c0_i32_0 = arith.constant 0 : i32
    %c0_i32_1 = arith.constant 0 : i32
    return %arg0, %c0_i32, %c0_i32_0 : i32, i32, i32
  }
  func.func @transform_2(%arg0: i32) -> (i32, i32, i32) {
    %c0_i32 = arith.constant 0 : i32
    %c0_i32_0 = arith.constant 0 : i32
    %c0_i32_1 = arith.constant 0 : i32
    return %arg0, %c0_i32, %c0_i32_0 : i32, i32, i32
  }
  func.func @transform_3(%arg0: i32) -> (i32, i32, i32) {
    %c0_i32 = arith.constant 0 : i32
    %c0_i32_0 = arith.constant 0 : i32
    %c0_i32_1 = arith.constant 0 : i32
    return %arg0, %c0_i32, %c0_i32_0 : i32, i32, i32
  }
}

</mosaic_0001>

<bundles_post_ra>
// kernel: tpu_custom_call.1
= control target key start
LH: loop header
LB: loop body
LE: loop exit
PB: predicated region body
PF: predicated region fallthrough
CT: control target
= control target key end

     0   :  { %s718_s12 = smov 0   ;;  %s850_s0 = inlined_call_operand.vmem [shape: f32[4,128,1], index: 0, kind: input, shape index: {}]   ;;  %s851_s1 = inlined_call_operand.vmem [shape: f32[4,128,1], index: 1, kind: input, shape index: {}]   ;;  %s852_s2 = inlined_call_operand.vmem [shape: f32[4,2,128], index: 2, kind: input, shape index: {}]   ;;  %s853_s3 = inlined_call_operand.vmem [shape: f32[4,1,1], index: 3, kind: output, shape index: {}]  }
   0x1 LB: > { %s664_s13 = sadd.s32 4294967295, %s695_s12   ;;  %p668_p0 = scmp.ge.s32.totalorder %s695_s12, 1  ;;  %s695_s12 = sphi %s718_s12, %s13_s12  }
   0x2   : > { %p156_p1 = scmp.lt.s32.totalorder %s695_s12, 5 }
   0x4   : > { %p157_p2 = pnand %p668_p0, %p156_p1 }
   0x5   : > { %p187_p3 = scmp.lt.s32.totalorder (!%p157_p2), %s664_s13, 3  ;;  %v697_v0 = vmov (!%p157_p2), 0   ;;  %v317_v33 = vlaneseq (!%p157_p2)  ;;  %vm591_vm0 = vcmask (!%p157_p2), 0  }
   0x6   : > { %160 = sbr.rel (%p157_p2) target bundleno = 381 (0x17d), region = 32  ;;  %688 = vset.pattern.permute.xlu1 (!%p157_p2), %v697_v0  ;;  %687 = vset.pattern.permute.xlu0 (!%p157_p2), %v697_v0 }
   0x7   : > { %v318_v34 = vshrl.u32 (!%p157_p2), %v317_v33, 7 }
   0x9   : > { %v419_v35 = vsub.s32 (!%p157_p2), 1, %v318_v34  ;;  %v319_v37 = vsub.s32 (!%p157_p2), 0, %v318_v34 }
   0xd   : > { %s855_s13 = smov (!%p187_p3, %s664_s13), 3 }
   0xe   : > { %s676_s14 = sshll.u32 %s855_s13, 7  ;;  %s673_s21 = sshll.u32 %s855_s13, 1 }
   0xf   : > { %s732_s17 = scalar_lea.vmem %s851_s1, %s676_s14  ;;  %s738_s20 = scalar_lea.vmem %s850_s0, %s676_s14 }
  0x10   : > { %v220_v1 = vld [vmem:[%s732_s17] sm:$0xff]  ;;  %v221_v3 = vld [vmem:[%s732_s17 + $0x8] sm:$0xff]  ;;  %v222_v5 = vld [vmem:[%s732_s17 + $0x10] sm:$0xff]  ;;  %s200_s24 = scalar_lea.vmem %s852_s2, %s673_s21  ;;  %s203_s27 = scalar_lea.vmem %s853_s3, %s855_s13 }
  0x11   : > { %339 = vperm.xlu1 %688, %v220_v1   ;;  %v204_v2 = vld [vmem:[%s738_s20] sm:$0xff]  ;;  %v205_v4 = vld [vmem:[%s738_s20 + $0x8] sm:$0xff]  ;;  %v206_v6 = vld [vmem:[%s738_s20 + $0x10] sm:$0xff] }
  0x12   : > { %239 = vperm.xlu0 %687, %v204_v2   ;;  %v223_v7 = vld [vmem:[%s732_s17 + $0x18] sm:$0xff]  ;;  %v224_v9 = vld [vmem:[%s732_s17 + $0x20] sm:$0xff]  ;;  %v225_v11 = vld [vmem:[%s732_s17 + $0x28] sm:$0xff] }
  0x13   : > { %v207_v8 = vld [vmem:[%s738_s20 + $0x18] sm:$0xff]  ;;  %v208_v10 = vld [vmem:[%s738_s20 + $0x20] sm:$0xff]  ;;  %v209_v12 = vld [vmem:[%s738_s20 + $0x28] sm:$0xff] }
  0x14   : > { %v226_v13 = vld [vmem:[%s732_s17 + $0x30] sm:$0xff]  ;;  %v227_v15 = vld [vmem:[%s732_s17 + $0x38] sm:$0xff]  ;;  %v228_v17 = vld [vmem:[%s732_s17 + $0x40] sm:$0xff] }
  0x15   : > { %344 = vperm.xlu1 %688, %v221_v3   ;;  %v210_v14 = vld [vmem:[%s738_s20 + $0x30] sm:$0xff]  ;;  %v211_v16 = vld [vmem:[%s738_s20 + $0x38] sm:$0xff]  ;;  %v212_v18 = vld [vmem:[%s738_s20 + $0x40] sm:$0xff] }
  0x16   : > { %244 = vperm.xlu0 %687, %v205_v4   ;;  %v229_v19 = vld [vmem:[%s732_s17 + $0x48] sm:$0xff]  ;;  %v230_v21 = vld [vmem:[%s732_s17 + $0x50] sm:$0xff]  ;;  %v231_v23 = vld [vmem:[%s732_s17 + $0x58] sm:$0xff] }
  0x17   : > { %v213_v20 = vld [vmem:[%s738_s20 + $0x48] sm:$0xff]  ;;  %v214_v22 = vld [vmem:[%s738_s20 + $0x50] sm:$0xff]  ;;  %v215_v24 = vld [vmem:[%s738_s20 + $0x58] sm:$0xff] }
  0x18   : > { %v232_v25 = vld [vmem:[%s732_s17 + $0x60] sm:$0xff]  ;;  %v233_v27 = vld [vmem:[%s732_s17 + $0x68] sm:$0xff]  ;;  %v219_v29 = vld [vmem:[%s738_s20 + $0x78] sm:$0xff] }
  0x19   : > { %349 = vperm.xlu1 %688, %v222_v5   ;;  %v216_v26 = vld [vmem:[%s738_s20 + $0x60] sm:$0xff]  ;;  %v217_v28 = vld [vmem:[%s738_s20 + $0x68] sm:$0xff]  ;;  %v218_v30 = vld [vmem:[%s738_s20 + $0x70] sm:$0xff] }
  0x1a   : > { %249 = vperm.xlu0 %687, %v206_v6   ;;  %v235_v31 = vld [vmem:[%s732_s17 + $0x78] sm:$0xff]  ;;  %v234_v32 = vld [vmem:[%s732_s17 + $0x70] sm:$0xff]  ;;  %v236_v36 = vld [vmem:[%s200_s24] sm:$0x3] }
  0x1b   : > { %v775_v38 = vrot.slane %v236_v36, %v419_v35  ;;  %v777_v39 = vrot.slane %v236_v36, %v319_v37 }
  0x1d   : > { %354 = vperm.xlu1 %688, %v223_v7  }
  0x1e   : > { %254 = vperm.xlu0 %687, %v207_v8  }
  0x21   : > { %359 = vperm.xlu1 %688, %v224_v9  }
  0x22   : > { %259 = vperm.xlu0 %687, %v208_v10  }
  0x25   : > { %364 = vperm.xlu1 %688, %v225_v11  }
  0x26   : > { %264 = vperm.xlu0 %687, %v209_v12  }
  0x29   : > { %369 = vperm.xlu1 %688, %v226_v13  }
  0x2a   : > { %269 = vperm.xlu0 %687, %v210_v14  }
  0x2d   : > { %374 = vperm.xlu1 %688, %v227_v15  }
  0x2e   : > { %274 = vperm.xlu0 %687, %v211_v16  }
  0x31   : > { %379 = vperm.xlu1 %688, %v228_v17  }
  0x32   : > { %279 = vperm.xlu0 %687, %v212_v18  }
  0x35   : > { %384 = vperm.xlu1 %688, %v229_v19  }
  0x36   : > { %284 = vperm.xlu0 %687, %v213_v20  }
  0x39   : > { %389 = vperm.xlu1 %688, %v230_v21  }
  0x3a   : > { %289 = vperm.xlu0 %687, %v214_v22  }
  0x3d   : > { %394 = vperm.xlu1 %688, %v231_v23  }
  0x3e   : > { %294 = vperm.xlu0 %687, %v215_v24  }
  0x41   : > { %399 = vperm.xlu1 %688, %v232_v25  }
  0x42   : > { %299 = vperm.xlu0 %687, %v216_v26  }
  0x45   : > { %404 = vperm.xlu1 %688, %v233_v27  }
  0x46   : > { %304 = vperm.xlu0 %687, %v217_v28  }
  0x49   : > { %314 = vperm.xlu1 %688, %v219_v29  }
  0x4a   : > { %309 = vperm.xlu0 %687, %v218_v30  }
  0x4d   : > { %414 = vperm.xlu1 %688, %v235_v31  }
  0x4e   : > { %409 = vperm.xlu0 %687, %v234_v32  }
  0x90   : > { %v340_v40 = vpop.permute.xlu1 %339 }
  0x91   : > { %v421_v41 = vsub.f32 %v340_v40, %v775_v38  ;;  %v240_v42 = vpop.permute.xlu0 %239 }
  0x92   : > { %v321_v43 = vsub.f32 %v240_v42, %v777_v39 }
  0x93   : > { %v453_v44 = vmul.f32 %v421_v41, %v421_v41 }
  0x94   : > { %v437_v45 = vmul.f32 %v321_v43, %v321_v43  ;;  %v345_v46 = vpop.permute.xlu1 %344 }
  0x95   : > { %v422_v47 = vsub.f32 %v345_v46, %v775_v38  ;;  %v245_v48 = vpop.permute.xlu0 %244 }
  0x96   : > { %v322_v49 = vsub.f32 %v245_v48, %v777_v39  ;;  %v783_v50 = vadd.f32 %v453_v44, %v437_v45 }
  0x97   : > { %v454_v51 = vmul.f32 %v422_v47, %v422_v47 }
  0x98   : > { %v438_v52 = vmul.f32 %v322_v49, %v322_v49  ;;  %485 = vmin.xlane.f32.xlu0 %v783_v50  ;;  %v350_v53 = vpop.permute.xlu1 %349 }
  0x99   : > { %v423_v54 = vsub.f32 %v350_v53, %v775_v38  ;;  %v250_v55 = vpop.permute.xlu0 %249 }
  0x9a   : > { %v323_v56 = vsub.f32 %v250_v55, %v777_v39  ;;  %v788_v57 = vadd.f32 %v454_v51, %v438_v52 }
  0x9b   : > { %v455_v58 = vmul.f32 %v423_v54, %v423_v54 }
  0x9c   : > { %v439_v59 = vmul.f32 %v323_v56, %v323_v56  ;;  %487 = vmin.xlane.f32.xlu1 %v788_v57  ;;  %v355_v60 = vpop.permute.xlu1 %354 }
  0x9d   : > { %v424_v61 = vsub.f32 %v355_v60, %v775_v38  ;;  %v255_v62 = vpop.permute.xlu0 %254 }
  0x9e   : > { %v324_v63 = vsub.f32 %v255_v62, %v777_v39  ;;  %v793_v0 = vadd.f32 %v455_v58, %v439_v59 }
  0x9f   : > { %v456_v1 = vmul.f32 %v424_v61, %v424_v61 }
  0xa0   : > { %v440_v2 = vmul.f32 %v324_v63, %v324_v63  ;;  %489 = vmin.xlane.f32.xlu0 %v793_v0  ;;  %v360_v3 = vpop.permute.xlu1 %359 }
  0xa1   : > { %v425_v4 = vsub.f32 %v360_v3, %v775_v38  ;;  %v260_v5 = vpop.permute.xlu0 %259 }
  0xa2   : > { %v325_v6 = vsub.f32 %v260_v5, %v777_v39  ;;  %v798_v7 = vadd.f32 %v456_v1, %v440_v2 }
  0xa3   : > { %v457_v8 = vmul.f32 %v425_v4, %v425_v4 }
  0xa4   : > { %v441_v9 = vmul.f32 %v325_v6, %v325_v6  ;;  %491 = vmin.xlane.f32.xlu0 %v798_v7  ;;  %v365_v10 = vpop.permute.xlu1 %364 }
  0xa5   : > { %v426_v11 = vsub.f32 %v365_v10, %v775_v38  ;;  %v265_v12 = vpop.permute.xlu0 %264 }
  0xa6   : > { %v326_v13 = vsub.f32 %v265_v12, %v777_v39  ;;  %v803_v14 = vadd.f32 %v457_v8, %v441_v9 }
  0xa7   : > { %v458_v15 = vmul.f32 %v426_v11, %v426_v11 }
  0xa8   : > { %v442_v16 = vmul.f32 %v326_v13, %v326_v13  ;;  %493 = vmin.xlane.f32.xlu1 %v803_v14  ;;  %v370_v17 = vpop.permute.xlu1 %369 }
  0xa9   : > { %v427_v18 = vsub.f32 %v370_v17, %v775_v38  ;;  %v270_v19 = vpop.permute.xlu0 %269 }
  0xaa   : > { %v327_v20 = vsub.f32 %v270_v19, %v777_v39  ;;  %v808_v21 = vadd.f32 %v458_v15, %v442_v16 }
  0xab   : > { %v459_v22 = vmul.f32 %v427_v18, %v427_v18 }
  0xac   : > { %v443_v23 = vmul.f32 %v327_v20, %v327_v20  ;;  %495 = vmin.xlane.f32.xlu0 %v808_v21  ;;  %v375_v24 = vpop.permute.xlu1 %374 }
  0xad   : > { %v428_v25 = vsub.f32 %v375_v24, %v775_v38  ;;  %v275_v26 = vpop.permute.xlu0 %274 }
  0xae   : > { %v328_v27 = vsub.f32 %v275_v26, %v777_v39  ;;  %v813_v28 = vadd.f32 %v459_v22, %v443_v23 }
  0xaf   : > { %v460_v29 = vmul.f32 %v428_v25, %v428_v25  ;;  %v518_v25 = vmin.f32 %v788_v57, %v808_v21 }
  0xb0   : > { %v444_v30 = vmul.f32 %v328_v27, %v328_v27  ;;  %497 = vmin.xlane.f32.xlu1 %v813_v28  ;;  %v380_v31 = vpop.permute.xlu1 %379  ;;  %v517_v27 = vmin.f32 %v783_v50, %v803_v14 }
  0xb1   : > { %v429_v32 = vsub.f32 %v380_v31, %v775_v38  ;;  %v280_v33 = vpop.permute.xlu0 %279 }
  0xb2   : > { %v329_v34 = vsub.f32 %v280_v33, %v777_v39  ;;  %v818_v35 = vadd.f32 %v460_v29, %v444_v30 }
  0xb3   : > { %v461_v36 = vmul.f32 %v429_v32, %v429_v32 }
  0xb4   : > { %v445_v37 = vmul.f32 %v329_v34, %v329_v34  ;;  %499 = vmin.xlane.f32.xlu0 %v818_v35  ;;  %v385_v40 = vpop.permute.xlu1 %384  ;;  %v520_v29 = vmin.f32 %v798_v7, %v818_v35 }
  0xb5   : > { %v430_v41 = vsub.f32 %v385_v40, %v775_v38  ;;  %v285_v42 = vpop.permute.xlu0 %284 }
  0xb6   : > { %v330_v43 = vsub.f32 %v285_v42, %v777_v39  ;;  %v477_v44 = vadd.f32 %v461_v36, %v445_v37 }
  0xb7   : > { %v462_v45 = vmul.f32 %v430_v41, %v430_v41 }
  0xb8   : > { %v446_v46 = vmul.f32 %v330_v43, %v330_v43  ;;  %501 = vmin.xlane.f32.xlu1 %v477_v44  ;;  %v390_v47 = vpop.permute.xlu1 %389  ;;  %v521_v40 = vmin.f32 %v517_v27, %v477_v44 }
  0xb9   : > { %v431_v48 = vsub.f32 %v390_v47, %v775_v38  ;;  %v290_v49 = vpop.permute.xlu0 %289 }
  0xba   : > { %v331_v51 = vsub.f32 %v290_v49, %v777_v39  ;;  %v478_v52 = vadd.f32 %v462_v45, %v446_v46 }
  0xbb   : > { %v463_v53 = vmul.f32 %v431_v48, %v431_v48 }
  0xbc   : > { %v447_v54 = vmul.f32 %v331_v51, %v331_v51  ;;  %503 = vmin.xlane.f32.xlu0 %v478_v52  ;;  %v395_v55 = vpop.permute.xlu1 %394  ;;  %v522_v32 = vmin.f32 %v518_v25, %v478_v52 }
  0xbd   : > { %v432_v56 = vsub.f32 %v395_v55, %v775_v38  ;;  %v295_v58 = vpop.permute.xlu0 %294 }
  0xbe   : > { %v332_v59 = vsub.f32 %v295_v58, %v777_v39  ;;  %v479_v60 = vadd.f32 %v463_v53, %v447_v54 }
  0xbf   : > { %v464_v61 = vmul.f32 %v432_v56, %v432_v56 }
  0xc0   : > { %v448_v62 = vmul.f32 %v332_v59, %v332_v59  ;;  %505 = vmin.xlane.f32.xlu1 %v479_v60  ;;  %v400_v63 = vpop.permute.xlu1 %399 }
  0xc1   : > { %v433_v1 = vsub.f32 %v400_v63, %v775_v38  ;;  %v300_v2 = vpop.permute.xlu0 %299 }
  0xc2   : > { %v333_v3 = vsub.f32 %v300_v2, %v777_v39  ;;  %v480_v4 = vadd.f32 %v464_v61, %v448_v62 }
  0xc3   : > { %v465_v5 = vmul.f32 %v433_v1, %v433_v1 }
  0xc4   : > { %v449_v6 = vmul.f32 %v333_v3, %v333_v3  ;;  %507 = vmin.xlane.f32.xlu0 %v480_v4  ;;  %v405_v8 = vpop.permute.xlu1 %404  ;;  %v524_v36 = vmin.f32 %v520_v29, %v480_v4 }
  0xc5   : > { %v434_v9 = vsub.f32 %v405_v8, %v775_v38  ;;  %v305_v10 = vpop.permute.xlu0 %304 }
  0xc6   : > { %v334_v11 = vsub.f32 %v305_v10, %v777_v39  ;;  %v481_v12 = vadd.f32 %v465_v5, %v449_v6 }
  0xc7   : > { %v466_v13 = vmul.f32 %v434_v9, %v434_v9 }
  0xc8   : > { %v450_v15 = vmul.f32 %v334_v11, %v334_v11  ;;  %509 = vmin.xlane.f32.xlu1 %v481_v12  ;;  %v315_v16 = vpop.permute.xlu1 %314  ;;  %v525_v50 = vmin.f32 %v521_v40, %v481_v12 }
  0xc9   : > { %v310_v17 = vpop.permute.xlu0 %309  ;;  %v336_v19 = vsub.f32 %v315_v16, %v777_v39 }
  0xca   : > { %v482_v18 = vadd.f32 %v466_v13, %v450_v15  ;;  %v335_v20 = vsub.f32 %v310_v17, %v777_v39  ;;  %v519_v39 = vmin.f32 %v793_v0, %v813_v28 }
  0xcb   : > { %v452_v30 = vmul.f32 %v336_v19, %v336_v19 }
  0xcc   : > { %511 = vmin.xlane.f32.xlu0 %v482_v18  ;;  %v415_v22 = vpop.permute.xlu1 %414  ;;  %v451_v33 = vmul.f32 %v335_v20, %v335_v20  ;;  %v523_v57 = vmin.f32 %v519_v39, %v479_v60  ;;  %v526_v21 = vmin.f32 %v522_v32, %v482_v18 }
  0xcd   : > { %v436_v23 = vsub.f32 %v415_v22, %v775_v38  ;;  %v410_v24 = vpop.permute.xlu0 %409 }
  0xce   : > { %v435_v26 = vsub.f32 %v410_v24, %v775_v38  ;;  %v529_v7 = vmin.f32 %v525_v50, %v526_v21 }
  0xcf   : > { %v468_v31 = vmul.f32 %v436_v23, %v436_v23 }
  0xd0   : > { %v467_v34 = vmul.f32 %v435_v26, %v435_v26 }
  0xd1   : > { %v484_v37 = vadd.f32 %v468_v31, %v452_v30 }
  0xd2   : > { %v483_v38 = vadd.f32 %v467_v34, %v451_v33 }
  0xd3   : > { %v528_v41 = vmin.f32 %v524_v36, %v484_v37  ;;  %515 = vmin.xlane.f32.xlu0 %v484_v37 }
  0xd4   : > { %513 = vmin.xlane.f32.xlu1 %v483_v38  ;;  %v527_v14 = vmin.f32 %v523_v57, %v483_v38 }
  0xd6   : > { %v530_v35 = vmin.f32 %v527_v14, %v528_v41 }
  0xd8   : > { %v531_v42 = vmin.f32 %v529_v7, %v530_v35 }
  0xda   : > { %v532_v43 = vrot.slane %v531_v42, 4 }
  0xdc   : > { %v533_v45 = vmin.f32 %v531_v42, %v532_v43 }
  0xde   : > { %v534_v0 = vrot.slane %v533_v45, 2 }
  0xe0   : > { %v535_v28 = vmin.f32 %v533_v45, %v534_v0 }
  0xe2   : > { %v536_v46 = vrot.slane %v535_v28, 1 }
  0xe4   : > { %v537_v47 = vmin.f32 %v535_v28, %v536_v46 }
  0xe6   : > { %587 = vmax.xlane.f32.xlu0 %v537_v47  ;;  %583 = vadd.xlane.f32.xlu1 %v537_v47 }
 0x125   : > { %v486_v44 = vpop.xlane.xlu0 %485 }
 0x129   : > { %v488_v49 = vpop.xlane.xlu1 %487 }
 0x12a   : > { %v538_v51 = vadd.f32 %v488_v49, %v486_v44 }
 0x12d   : > { %v490_v48 = vpop.xlane.xlu0 %489 }
 0x12e   : > { %v539_v53 = vadd.f32 %v538_v51, %v490_v48 }
 0x131   : > { %v492_v52 = vpop.xlane.xlu0 %491 }
 0x132   : > { %v540_v55 = vadd.f32 %v539_v53, %v492_v52 }
 0x135   : > { %v494_v54 = vpop.xlane.xlu1 %493 }
 0x136   : > { %v541_v58 = vadd.f32 %v540_v55, %v494_v54  ;;  %v561_v15 = vmax.f32 %v486_v44, %v494_v54 }
 0x139   : > { %v496_v56 = vpop.xlane.xlu0 %495 }
 0x13a   : > { %v542_v60 = vadd.f32 %v541_v58, %v496_v56  ;;  %v562_v10 = vmax.f32 %v488_v49, %v496_v56 }
 0x13d   : > { %v498_v59 = vpop.xlane.xlu1 %497 }
 0x13e   : > { %v543_v62 = vadd.f32 %v542_v60, %v498_v59  ;;  %v563_v16 = vmax.f32 %v490_v48, %v498_v59 }
 0x141   : > { %v500_v61 = vpop.xlane.xlu0 %499 }
 0x142   : > { %v544_v1 = vadd.f32 %v543_v62, %v500_v61  ;;  %v564_v13 = vmax.f32 %v492_v52, %v500_v61 }
 0x145   : > { %v502_v63 = vpop.xlane.xlu1 %501 }
 0x146   : > { %v545_v3 = vadd.f32 %v544_v1, %v502_v63  ;;  %v565_v20 = vmax.f32 %v561_v15, %v502_v63 }
 0x149   : > { %v504_v2 = vpop.xlane.xlu0 %503 }
 0x14a   : > { %v546_v5 = vadd.f32 %v545_v3, %v504_v2  ;;  %v566_v17 = vmax.f32 %v562_v10, %v504_v2 }
 0x14d   : > { %v506_v4 = vpop.xlane.xlu1 %505 }
 0x14e   : > { %v547_v8 = vadd.f32 %v546_v5, %v506_v4  ;;  %v567_v22 = vmax.f32 %v563_v16, %v506_v4 }
 0x151   : > { %v508_v6 = vpop.xlane.xlu0 %507 }
 0x152   : > { %v548_v11 = vadd.f32 %v547_v8, %v508_v6  ;;  %v568_v19 = vmax.f32 %v564_v13, %v508_v6 }
 0x155   : > { %v510_v9 = vpop.xlane.xlu1 %509 }
 0x156   : > { %v549_v18 = vadd.f32 %v548_v11, %v510_v9  ;;  %v569_v29 = vmax.f32 %v565_v20, %v510_v9 }
 0x159   : > { %v512_v12 = vpop.xlane.xlu0 %511 }
 0x15a   : > { %v550_v23 = vadd.f32 %v549_v18, %v512_v12  ;;  %v570_v24 = vmax.f32 %v566_v17, %v512_v12 }
 0x15c   : > { %v573_v39 = vmax.f32 %v569_v29, %v570_v24 }
 0x160   : > { %v516_v25 = vpop.xlane.xlu0 %515 }
 0x161   : > { %v514_v26 = vpop.xlane.xlu1 %513  ;;  %v572_v27 = vmax.f32 %v568_v19, %v516_v25 }
 0x162   : > { %v551_v30 = vadd.f32 %v550_v23, %v514_v26  ;;  %v571_v31 = vmax.f32 %v567_v22, %v514_v26 }
 0x164   : > { %v552_v32 = vadd.f32 %v551_v30, %v516_v25  ;;  %v574_v33 = vmax.f32 %v571_v31, %v572_v27 }
 0x166   : > { %v553_v34 = vrot.slane %v552_v32, 4  ;;  %v575_v36 = vmax.f32 %v573_v39, %v574_v33 }
 0x168   : > { %v554_v37 = vadd.f32 %v553_v34, %v552_v32  ;;  %v576_v40 = vrot.slane %v575_v36, 4 }
 0x16a   : > { %v555_v57 = vrot.slane %v554_v37, 2  ;;  %v577_v21 = vmax.f32 %v575_v36, %v576_v40 }
 0x16c   : > { %v556_v38 = vadd.f32 %v555_v57, %v554_v37  ;;  %v578_v41 = vrot.slane %v577_v21, 2 }
 0x16e   : > { %v557_v50 = vrot.slane %v556_v38, 1  ;;  %v579_v14 = vmax.f32 %v577_v21, %v578_v41 }
 0x170   : > { %v558_v7 = vadd.f32 %v557_v50, %v556_v38  ;;  %v580_v35 = vrot.slane %v579_v14, 1 }
 0x172   : > { %v560_v42 = vmul.f32 0.0078125, %v558_v7  ;;  %v581_v43 = vmax.f32 %v579_v14, %v580_v35 }
 0x173   : > { %v584_v45 = vpop.xlane.xlu1 %583  ;;  %v588_v47 = vpop.xlane.xlu0 %587 }
 0x174   : > { %v582_v0 = vadd.f32 %v581_v43, %v560_v42  ;;  %v585_v28 = vmul.f32 0.0078125, %v584_v45 }
 0x176   : > { %v586_v46 = vadd.f32 %v585_v28, %v582_v0 }
 0x178   : > { %v589_v44 = vadd.f32 %v588_v47, %v586_v46 }
 0x17a   : > { %v590_v48 = vmul.f32 0.005, %v589_v44 }
 0x17c   : > { %592 = vst.msk [vmem:[%s203_s27] sm:$0x1] %vm591_vm0, %v590_v48 }
 0x17d PF: > { %s13_s12 = sadd.s32 1, %s695_s12  }
 0x17e   : > { %p10_p4 = scmp.ge.s32.totalorder %s13_s12, 6  }
 0x180   :  { %12 = sbr.rel (!%p10_p4) target bundleno = 1 (0x1), region = 68 }

</bundles_post_ra>
